<compile_context>
chip_gen: v7x
topology: tpu7x:2x2x1
jax: 0.10.0
libtpu: 0.0.40
codegen_flags: <defaults>
</compile_context>

<pallas_src>
import functools
import math

import jax
import jax.numpy as jnp
from jax.experimental import pallas as pl
from jax.experimental.pallas import tpu as pltpu


def _round_up(x: int, m: int) -> int:
    return ((x + m - 1) // m) * m


def _sinusoidal_kernel(time_ref, fp_ref, out_ref, *, k: int):
    # time_ref : (TB, k)   f32 timesteps (k timesteps packed per output row)
    # fp_ref   : (k+1, W)  f32; rows 0..k-1 = block-diagonal freq rows, row k = phase row
    # out_ref  : (TB, W)   W = k*dim
    #
    # out[r, p*dim + q] = sin(time[r, p] * freqs_full[q] + phase_full[q])
    # cos(x) == sin(x + pi/2), so one EUP sin covers both halves of the embedding.
    args = fp_ref[k:k + 1, :]                       # (1, W) phase row, broadcasts over TB
    for p in range(k):                              # k is 1 or 2; static unroll, pure VPU
        args = args + time_ref[:, p:p + 1] * fp_ref[p:p + 1, :]
    out_ref[...] = jnp.sin(args).astype(out_ref.dtype)


def sinusoidal_position_embeddings(
    time: jax.Array,
    dim: int,
    *,
    out_dtype=jnp.float32,   # bf16 recommended on v5e callers (math stays f32)
    block_b: int = 2048,
) -> jax.Array:
    """Pallas equivalent of SinusoidalPositionEmbeddings(dim)(time)."""
    assert time.ndim == 1, "time must be a 1-D batch of timesteps"
    assert dim % 2 == 0, "dim must be even (PyTorch module implicitly assumes this)"
    half_dim = dim // 2
    assert half_dim >= 2, "dim must be >= 4 (half_dim - 1 appears in a denominator)"

    b = time.shape[0]

    # Host-side frequency table, identical math to the torch reference, plus the
    # pi/2 phase row that turns the cos half into a sin of a shifted argument.
    log_scale = math.log(10000.0) / (half_dim - 1)
    freqs = jnp.exp(jnp.arange(half_dim, dtype=jnp.float32) * -log_scale)
    freqs_full = jnp.concatenate([freqs, freqs])                            # (dim,)
    phase_full = jnp.concatenate(
        [jnp.zeros((half_dim,), jnp.float32),
         jnp.full((half_dim,), math.pi / 2, jnp.float32)])                  # (dim,)

    # Lane-dense output packing for dim < 128: pack k = 128/dim timesteps per row so
    # the output last dim is a full 128-lane multiple (unmasked vst).
    k = 1
    if dim < 128 and 128 % dim == 0 and b % (128 // dim) == 0:
        k = 128 // dim
    w = k * dim
    rows = b // k

    freq_rows = [
        jnp.zeros((w,), jnp.float32).at[p * dim:(p + 1) * dim].set(freqs_full)
        for p in range(k)
    ]
    fp = jnp.stack(freq_rows + [jnp.tile(phase_full, k)], axis=0)           # (k+1, w)
    time_rows = time.astype(jnp.float32).reshape(rows, k)

    # Batch tile: aim for >= 2 grid steps when there is enough work so v7x can shard
    # rows across both TensorCores; cap against a ~24 MiB VMEM budget (32 MiB scoped
    # default on v7x; double-buffered output tile + f32 args temp).
    if rows <= 16:
        tb = rows                       # single step; block == full array (no 8/16 constraint)
    else:
        tb = min(block_b, _round_up(pl.cdiv(rows, 2), 16))
        vmem_budget = 24 * 1024 * 1024
        max_tb = vmem_budget // (3 * w * 4)
        tb = max(16, min(tb, (max_tb // 16) * 16))
        tb = min(tb, rows)

    grid = (pl.cdiv(rows, tb),)
    out_bytes = jnp.dtype(out_dtype).itemsize

    out = pl.pallas_call(
        functools.partial(_sinusoidal_kernel, k=k),
        out_shape=jax.ShapeDtypeStruct((rows, w), out_dtype),
        grid=grid,
        in_specs=[
            pl.BlockSpec((tb, k), lambda i: (i, 0)),        # packed per-tile timesteps
            pl.BlockSpec((k + 1, w), lambda i: (0, 0)),     # shared freq+phase table
        ],
        out_specs=pl.BlockSpec((tb, w), lambda i: (i, 0)),
        compiler_params=pltpu.CompilerParams(
            dimension_semantics=("parallel",),              # rows independent -> megacore on v7x
        ),
        cost_estimate=pl.CostEstimate(
            flops=2 * b * dim,
            transcendentals=b * dim,
            bytes_accessed=b * dim * out_bytes + b * 4 + (k + 1) * w * 4,
        ),
    )(time_rows, fp)

    # Free row-major view back to (B, dim):
    # row r, lane p*dim + q  <->  batch index r*k + p, embedding position q.
    return out.reshape(b, dim)
    # TODO(synk): for production, fusing this tiny op into the consuming time-MLP kernel
    # (or leaving it to XLA) may beat any standalone tuning — it is launch-overhead bound
    # at typical diffusion batch sizes.


def _reference(time: jax.Array, dim: int) -> jax.Array:
    half_dim = dim // 2
    emb = math.log(10000.0) / (half_dim - 1)
    emb = jnp.exp(jnp.arange(half_dim, dtype=jnp.float32) * -emb)
    emb = time.astype(jnp.float32)[:, None] * emb[None, :]
    return jnp.concatenate([jnp.sin(emb), jnp.cos(emb)], axis=-1)


if __name__ == "__main__":
    key = jax.random.PRNGKey(0)
    batch = 8
    dim = 64

    # Deterministic diffusion-style timesteps in [0, 1000).
    time = jax.random.uniform(
        key, (batch,), dtype=jnp.float32, minval=0.0, maxval=1000.0
    )

    out = jax.block_until_ready(sinusoidal_position_embeddings(time, dim))
    ref = _reference(time, dim)

    assert out.shape == (batch, dim)
    assert out.dtype == jnp.float32
    # sin/cos of arguments up to ~1e3 rad in f32: range-reduction differences between
    # the Mosaic and XLA transcendental expansions (plus the ~1e-7-relative pi/2 phase
    # rounding) can reach ~1e-4, so use a safe (still meaningful) tolerance.
    max_err = float(jnp.max(jnp.abs(out - ref)))
    assert jnp.allclose(out, ref, atol=2e-3, rtol=2e-3), max_err

    print("KERNEL_OK")
</pallas_src>

<mosaic_0001>
module attributes {stable_mosaic.version = 11 : i64} {
  func.func @_sinusoidal_kernel(%arg0: i32, %arg1: memref<4x2xf32, #tpu.memory_space<vmem>>, %arg2: memref<3x128xf32, #tpu.memory_space<vmem>>, %arg3: memref<4x128xf32, #tpu.memory_space<vmem>>) attributes {dimension_semantics = [#tpu.dimension_semantics<parallel>], iteration_bounds = array<i64: 1>, scalar_prefetch = 0 : i64, scratch_operands = 0 : i64, tpu.core_type = #tpu.core_type<tc>, window_params = [{transform_indices = @transform_0, window_bounds = array<i64: 4, 2>}, {pipeline_mode = #tpu.pipeline_mode<synchronous>, transform_indices = @transform_1, window_bounds = array<i64: 3, 128>}, {transform_indices = @transform_2, window_bounds = array<i64: 4, 128>}]} {
    %c2 = arith.constant 2 : index
    %c0 = arith.constant 0 : index
    %0 = vector.load %arg2[%c2, %c0] : memref<3x128xf32, #tpu.memory_space<vmem>>, vector<1x128xf32>
    %c0_0 = arith.constant 0 : index
    %c0_1 = arith.constant 0 : index
    %1 = vector.load %arg1[%c0_0, %c0_1] : memref<4x2xf32, #tpu.memory_space<vmem>>, vector<4x1xf32>
    %c0_2 = arith.constant 0 : index
    %c0_3 = arith.constant 0 : index
    %2 = vector.load %arg2[%c0_2, %c0_3] : memref<3x128xf32, #tpu.memory_space<vmem>>, vector<1x128xf32>
    %3 = vector.broadcast %1 : vector<4x1xf32> to vector<4x128xf32>
    %4 = vector.broadcast %2 : vector<1x128xf32> to vector<4x128xf32>
    %5 = arith.mulf %3, %4 : vector<4x128xf32>
    %6 = vector.broadcast %0 : vector<1x128xf32> to vector<4x128xf32>
    %7 = arith.addf %6, %5 : vector<4x128xf32>
    %c0_4 = arith.constant 0 : index
    %c1 = arith.constant 1 : index
    %8 = vector.load %arg1[%c0_4, %c1] : memref<4x2xf32, #tpu.memory_space<vmem>>, vector<4x1xf32>
    %c1_5 = arith.constant 1 : index
    %c0_6 = arith.constant 0 : index
    %9 = vector.load %arg2[%c1_5, %c0_6] : memref<3x128xf32, #tpu.memory_space<vmem>>, vector<1x128xf32>
    %10 = vector.broadcast %8 : vector<4x1xf32> to vector<4x128xf32>
    %11 = vector.broadcast %9 : vector<1x128xf32> to vector<4x128xf32>
    %12 = arith.mulf %10, %11 : vector<4x128xf32>
    %13 = arith.addf %7, %12 : vector<4x128xf32>
    %14 = math.sin %13 : vector<4x128xf32>
    %c0_7 = arith.constant 0 : index
    %c0_8 = arith.constant 0 : index
    %15 = vector.load %arg3[%c0_7, %c0_8] : memref<4x128xf32, #tpu.memory_space<vmem>>, vector<4x128xf32>
    tpu.vector_store %arg3[%c0_7, %c0_8], %14 {strides = array<i32>} : memref<4x128xf32, #tpu.memory_space<vmem>>, vector<4x128xf32>,
    return
  }
  func.func @transform_0(%arg0: i32) -> (i32, i32) {
    %c0_i32 = arith.constant 0 : i32
    %c0_i32_0 = arith.constant 0 : i32
    return %arg0, %c0_i32 : i32, i32
  }
  func.func @transform_1(%arg0: i32) -> (i32, i32) {
    %c0_i32 = arith.constant 0 : i32
    %c0_i32_0 = arith.constant 0 : i32
    %c0_i32_1 = arith.constant 0 : i32
    return %c0_i32, %c0_i32_0 : i32, i32
  }
  func.func @transform_2(%arg0: i32) -> (i32, i32) {
    %c0_i32 = arith.constant 0 : i32
    %c0_i32_0 = arith.constant 0 : i32
    return %arg0, %c0_i32 : i32, i32
  }
}

</mosaic_0001>

<bundles_post_ra>
// kernel: tpu_custom_call.1
= control target key start
LH: loop header
LB: loop body
LE: loop exit
PB: predicated region body
PF: predicated region fallthrough
CT: control target
= control target key end

     0   :  { %v210_v1 = vmov 0   ;;  %s279_s0 = inlined_call_operand.vmem [shape: f32[4,2], index: 0, kind: input, shape index: {}]   ;;  %s280_s1 = inlined_call_operand.vmem [shape: f32[3,128], index: 1, kind: input, shape index: {}]   ;;  %s281_s2 = inlined_call_operand.hbm [shape: f32[4,128], index: 2, kind: output, shape index: {}]  }
   0x1   :  { %v13_v0 = vld [vmem:[%s279_s0] sm:$0xf]  ;;  %180 = vset.pattern.permute.xlu0 %v210_v1 }
   0x2   :  { %7 = vsyncpa [#allocation3], 0  ;;  %17 = vperm.xlu0 %180, %v13_v0   ;;  %v211_v2 = vmov 1   ;;  %v160_v3 = vld [vmem:[%s280_s1] ss:$0 sm:$0xff]  ;;  %s218_s0 = smov [#allocation2]  }
   0x3   :  { %v161_v6 = vld [vmem:[%s280_s1 + $0x2] ss:$0 sm:$0xff]  ;;  %v162_v7 = vld [vmem:[%s280_s1 + $0x1] ss:$0 sm:$0xff]  ;;  %v212_v23 = vmov 2102212464  }
   0x4   :  { %v213_v25 = vmov 920167782   ;;  %v214_v29 = vmov 1326507024   ;;  %v215_v31 = vmov 683565275  }
   0x5   :  { %v216_v33 = vmov 2475754826   ;;  %v217_v36 = vmov 2131351028   ;;  %s152_s1 = sshll.u32 %s218_s0, 4  ;;  %s153_s1 = int_to_ptr.vmem [resolvable:$true] %s152_s1 }
   0x6   :  { %181 = vset.pattern.permute.xlu0 %v211_v2  ;;  %s186_s17 = scalar_lea.vmem %s153_s1, 64  ;;  %p191_p1 = scmp.lt.s32.totalorder %s153_s1, %s153_s1 }
   0x7   :  { %32 = vperm.xlu0 %181, %v13_v0   ;;  %p187_p0 = scmp.ne.s32.totalorder %s153_s1, %s186_s17  ;;  %p192_p2 = scmp.lt.s32.totalorder %s186_s17, %s186_s17 }
   0x9   :  { %p193_p3 = por %p192_p2, %p191_p1 }
   0xb   :  { %p194_p4 = pnand %p193_p3, %p187_p0 }
  0x81   :  { %v18_v4 = vpop.permute.xlu0 %17 }
  0x82   :  { %v24_v5 = vmul.f32 %v160_v3, %v18_v4 }
  0x84   :  { %v29_v9 = vadd.f32 %v161_v6, %v24_v5 }
  0x86   :  { %v33_v8 = vpop.permute.xlu0 %32 }
  0x87   :  { %v39_v10 = vmul.f32 %v162_v7, %v33_v8 }
  0x89   :  { %v246_v11 = vadd.f32 %v39_v10, %v29_v9 }
  0x8b   :  { %v44_v12 = vand.u32 2139095040, %v246_v11  ;;  %v41_v13 = vand.u32 2147483647, %v246_v11  ;;  %vm43_vm7 = vcmp.lt.s32.totalorder %v246_v11, 0  ;;  %vm133_vm12 = vweird.f32 %v246_v11 }
  0x8d   :  { %v45_v14 = vshrl.u32 %v44_v12, 23  ;;  %v48_v16 = vand.u32 8388607, %v41_v13  ;;  %vm42_vm8 = vcmp.le.f32.partialorder %v41_v13, 0.7853982 }
  0x8f   :  { %v163_v15 = vadd.s32 4294967169, %v45_v14  ;;  %v49_v19 = vor.u32 8388608, %v48_v16 }
  0x91   :  { %v51_v17 = vadd.s32 1, %v163_v15  ;;  %v89_v27 = vshll.u32 %v49_v19, 8 }
  0x93   :  { %vm52_vm0 = vcmp.gt.s32.totalorder %v51_v17, 0 }
  0x94   :  { %v53_v18 = vsel %vm52_vm0, %v51_v17, 0 }
  0x95   :  { %v55_v20 = vand.u32 31, %v53_v18  ;;  %v54_v21 = vshrl.u32 %v53_v18, 5 }
  0x97   :  { %v56_v22 = vsub.s32 32, %v55_v20  ;;  %v67_v24 = vshll.u32 %v212_v23, %v55_v20  ;;  %v70_v26 = vshll.u32 %v213_v25, %v55_v20  ;;  %v58_v32 = vshll.u32 %v215_v31, %v55_v20 }
  0x98   :  { %v61_v35 = vshll.u32 %v216_v33, %v55_v20  ;;  %v64_v38 = vshll.u32 %v217_v36, %v55_v20  ;;  %vm76_vm1 = vcmp.lt.s32.totalorder %v54_v21, 4  ;;  %vm73_vm2 = vcmp.lt.s32.totalorder %v54_v21, 1 }
  0x99   :  { %v68_v28 = vshrl.u32 %v213_v25, %v56_v22  ;;  %v71_v30 = vshrl.u32 %v214_v29, %v56_v22  ;;  %v59_v34 = vshrl.u32 %v216_v33, %v56_v22  ;;  %v62_v37 = vshrl.u32 %v217_v36, %v56_v22 }
  0x9a   :  { %v65_v39 = vshrl.u32 %v212_v23, %v56_v22  ;;  %v57_v43 = vshrl.u32 %v215_v31, %v56_v22  ;;  %vm74_vm3 = vcmp.lt.s32.totalorder %v54_v21, 2  ;;  %vm75_vm4 = vcmp.lt.s32.totalorder %v54_v21, 3 }
  0x9b   :  { %v69_v40 = vor.u32 %v68_v28, %v67_v24  ;;  %v72_v41 = vor.u32 %v71_v30, %v70_v26  ;;  %v60_v42 = vor.u32 %v59_v34, %v58_v32  ;;  %v63_v44 = vor.u32 %v62_v37, %v61_v35 }
  0x9c   :  { %v66_v45 = vor.u32 %v65_v39, %v64_v38 }
  0x9d   :  { %v82_v46 = vsel %vm76_vm1, %v69_v40, 920167782  ;;  %v86_v47 = vsel %vm76_vm1, %v72_v41, 1326507024  ;;  %v81_v49 = vsel %vm73_vm2, %v60_v42, %v63_v44  ;;  %v77_v52 = vsel %vm73_vm2, %v57_v43, %v60_v42 }
  0x9e   :  { %v78_v48 = vsel %vm76_vm1, %v66_v45, 2102212464  ;;  %v83_v50 = vsel %vm75_vm4, %v66_v45, %v82_v46  ;;  %v85_v51 = vsel %vm73_vm2, %v63_v44, %v66_v45  ;;  %v87_v55 = vsel %vm75_vm4, %v69_v40, %v86_v47 }
  0x9f   :  { %v79_v53 = vsel %vm75_vm4, %v63_v44, %v78_v48  ;;  %v84_v54 = vsel %vm74_vm3, %v81_v49, %v83_v50  ;;  %v88_v56 = vsel %vm74_vm3, %v85_v51, %v87_v55 }
  0xa0   :  { %v252_v57 = vmul.u32.u64.low %v89_v27, %v84_v54  ;;  %v253_v58 = vmul.u32.u64.high %v89_v27, %v84_v54, %v252_v57  ;;  %v255_v59 = vmul.u32.u64.low %v89_v27, %v88_v56  ;;  %v256_v60 = vmul.u32.u64.high %v89_v27, %v88_v56, %v255_v59 }
  0xa1   :  { %v80_v61 = vsel %vm74_vm3, %v77_v52, %v79_v53 }
  0xa2   :  { %v99_v62 = vadd.s32 1, %v253_v58  ;;  %v96_v63 = vmul.u32 %v89_v27, %v80_v61  ;;  %vm98_vm5 = vc.u32 %v256_v60, %v252_v57  ;;  %v97_v12 = vadd.s32 %v252_v57, %v256_v60 }
  0xa4   :  { %v100_v0 = vsel %vm98_vm5, %v99_v62, %v253_v58 }
  0xa5   :  { %v101_v1 = vadd.s32 %v100_v0, %v96_v63 }
  0xa7   :  { %v102_v2 = vadd.s32 536870912, %v101_v1 }
  0xa9   :  { %v103_v3 = vshrl.u32 %v102_v2, 30 }
  0xab   :  { %v104_v4 = vshll.u32 %v103_v3, 30  ;;  %v127_v25 = vsub.s32 4, %v103_v3 }
  0xad   :  { %v105_v5 = vsub.s32 %v101_v1, %v104_v4  ;;  %v128_v28 = vsel %vm43_vm7, %v127_v25, %v103_v3 }
  0xae   :  { %v130_v30 = vsel %vm42_vm8, 0, %v128_v28 }
  0xaf   :  { %v107_v6 = vsub.s32 0, %v105_v5  ;;  %v134_v31 = vadd.s32 3, %v130_v30 }
  0xb1   :  { %v164_v7 = vmin.u32 %v107_v6, %v105_v5  ;;  %v135_v32 = vand.u32 3, %v134_v31 }
  0xb3   :  { %v109_v8 = vclz %v164_v7  ;;  %vm140_vm9 = vcmp.eq.s32.totalorder %v135_v32, 2  ;;  %vm137_vm10 = vcmp.eq.s32.totalorder %v135_v32, 0  ;;  %vm136_vm11 = vcmp.lt.s32.totalorder %v135_v32, 2 }
  0xb5   :  { %v165_v9 = vadd.s32 4294967294, %v109_v8 }
  0xb7   :  { %vm166_vm6 = vcmp.lt.s32.totalorder %v165_v9, 0 }
  0xb8   :  { %v112_v10 = vsel %vm166_vm6, 0, %v165_v9 }
  0xb9   :  { %v113_v14 = vsub.s32 32, %v112_v10  ;;  %v117_v15 = vsub.s32 4294967266, %v112_v10  ;;  %v114_v16 = vshll.u32 %v105_v5, %v112_v10 }
  0xbb   :  { %v115_v17 = vshrl.u32 %v97_v12, %v113_v14  ;;  %v118_v18 = vadd.s32 127, %v117_v15 }
  0xbd   :  { %v116_v19 = vor.u32 %v115_v17, %v114_v16  ;;  %v119_v20 = vshll.u32 %v118_v18, 23 }
  0xbf   :  { %v120_v21 = vor.u32 4788187, %v119_v20  ;;  %v123_v23 = vcvt.s32.f32 %v116_v19 }
  0xc1   :  { %v121_v22 = vand.u32 2147483647, %v120_v21 }
  0xc3   :  { %v124_v24 = vmul.f32 %v123_v23, %v121_v22 }
  0xc5   :  { %v125_v26 = vxor.u32 2147483648, %v124_v24 }
  0xc7   :  { %v126_v27 = vsel %vm43_vm7, %v125_v26, %v124_v24 }
  0xc8   :  { %v129_v29 = vsel %vm42_vm8, %v246_v11, %v126_v27 }
  0xc9   :  { %182 = vcosq.f32 %v129_v29 }
  0xca   :  { %184 = vsinq.f32 %v129_v29 }
  0xd3   :  { %v183_v33 = vpop.eup %182 }
  0xd4   :  { %v185_v34 = vpop.eup %184  ;;  %v141_v35 = vxor.u32 2147483648, %v183_v33 }
  0xd5   :  { %v138_v36 = vxor.u32 2147483648, %v185_v34 }
  0xd6   :  { %v142_v37 = vsel %vm140_vm9, %v141_v35, %v185_v34 }
  0xd7   :  { %v139_v13 = vsel %vm137_vm10, %v183_v33, %v138_v36 }
  0xd8   :  { %v143_v38 = vsel %vm136_vm11, %v139_v13, %v142_v37 }
  0xd9   :  { %v144_v39 = vsel %vm133_vm12, nan, %v143_v38 }
  0xda   :  { %145 = vst [vmem:[#allocation2] sm:$0xf] %v144_v39 }
  0xdb   :  { %197 = shalt.err (!%p194_p4)
}
  0xdc   :  { %s198_s20 = scalar_lea.hbm %s281_s2, 64 }
  0xdd   :  { %p199_p5 = scmp.ne.s32.totalorder %s281_s2, %s198_s20  ;;  %p202_p6 = scmp.lt.u32.totalorder %s198_s20, %s281_s2 }
  0xdf   :  { %p204_p7 = pnand %p202_p6, %p199_p5 }
  0xe1   :  { %207 = shalt.err (!%p204_p7)
}
  0xe2   :  { %155 = dma.vmem_to_hbm [thread:$0]  %s153_s1, 64, %s281_s2, [#allocation3]  }
  0xe3   :  { %208 = dma.done.wait [#allocation3], 64  }
  0xe4   :  { %209 = vsyncadd [#allocation3], 4294967232 }
  0xe5   :  { %159 = vsyncpa [#allocation3], 1 }

</bundles_post_ra>
